<compile_context>
chip_gen: v6e
topology: v6e:2x2x1
jax: 0.10.0
libtpu: 0.0.40
codegen_flags: <defaults>
</compile_context>

<pallas_src>
import functools

import jax
import jax.numpy as jnp
from jax.experimental import pallas as pl
from jax.experimental.pallas import tpu as pltpu

SMOOTH = 1e-5        # dice smoothing, same as the reference DiceLoss
_LANE = 128


def _pick_tile_rows(n_classes, rows_total):
    """Rows-of-128-pixels per grid step.

    Sized so (double-buffered logits+target blocks) + (f32 scratch accumulators)
    stay comfortably under the 32 MiB scoped-VMEM default on every generation
    (v5e/v6e 128 MiB physical, v7x 64 MiB physical / 2 TCs).
    """
    per_row = (2 * (n_classes + 1) + (3 * n_classes + 1)) * _LANE * 4
    budget = 12 * 1024 * 1024
    max_rows = max(8, min(256, (budget // per_row) // 8 * 8))   # <= 32768 px / step
    if rows_total <= max_rows:
        return rows_total          # single tile per image (block == full extent)
    return max_rows


def _seg_stats_kernel(logit_ref, tgt_ref,                 # inputs
                      ce_ref, i_ref, z_ref, y_ref,        # per-image outputs
                      ce_acc, i_acc, z_acc, y_acc,        # VMEM scratch accumulators
                      *, n_classes, tile_r, n_tiles, n_pix, ragged):
    """Accumulates CE-sum and per-class dice statistics for one image (grid axis 0).

    logit_ref : [1, C, tile_r, 128]  logits (any float dtype, upcast to f32)
    tgt_ref   : [1, tile_r, 128]     int32 class index per pixel
    ce_ref    : [1, 1, 128]          per-lane partial sums of (lse - logit[target])
    i_ref     : [1, 1, C*128]        per-lane partial sums of p_c * onehot_c
    z_ref     : [1, 1, C*128]        per-lane partial sums of p_c^2
    y_ref     : [1, 1, C*128]        per-lane partial sums of onehot_c
    """
    t = pl.program_id(1)

    @pl.when(t == 0)
    def _init():
        ce_acc[...] = jnp.zeros_like(ce_acc)
        i_acc[...] = jnp.zeros_like(i_acc)
        z_acc[...] = jnp.zeros_like(z_acc)
        y_acc[...] = jnp.zeros_like(y_acc)

    tgt = tgt_ref[0]                                       # (tile_r, 128) int32

    if ragged:
        # Tail mask built from static shape info (no mask stream from HBM), plus
        # input sanitisation so out-of-bounds block reads can never produce NaN.
        row = jax.lax.broadcasted_iota(jnp.int32, (tile_r, _LANE), 0)
        lane = jax.lax.broadcasted_iota(jnp.int32, (tile_r, _LANE), 1)
        gidx = (t * tile_r + row) * _LANE + lane
        valid = gidx < n_pix
        maskf = valid.astype(jnp.float32)
        tgt = jnp.where(valid, tgt, 0)

    # Load per-class slabs: pixels stay (sublane, lane)-dense; every class-axis
    # reduction below is unrolled elementwise VPU work (no cross-sublane XLU).
    slabs = []
    for c in range(n_classes):
        s = logit_ref[0, c].astype(jnp.float32)            # (tile_r, 128)
        if ragged:
            s = jnp.where(valid, s, 0.0)
        slabs.append(s)

    m = slabs[0]
    for c in range(1, n_classes):
        m = jnp.maximum(m, slabs[c])
    exps = [jnp.exp(s - m) for s in slabs]                 # EUP: C exps / pixel
    denom = exps[0]
    for c in range(1, n_classes):
        denom = denom + exps[c]
    # One reciprocal per pixel + C VPU multiplies instead of C EUP divides.
    # (approx=True would cut EUP further; kept exact for bit-faithful numerics.)
    inv_denom = pl.reciprocal(denom, approx=False)
    lse = jnp.log(denom) + m                               # (tile_r, 128)

    # logit of the target class (one-hot gather replacement).
    picked = jnp.zeros_like(m)
    for c in range(n_classes):
        picked = jnp.where(tgt == c, slabs[c], picked)
    ce_term = lse - picked
    if ragged:
        ce_term = ce_term * maskf
    ce_acc[...] += ce_term                                 # pure VPU accumulate

    # Dice statistics accumulated into lane-dense scratch: class c occupies the
    # aligned lane columns [c*128, (c+1)*128) -> pure VPU adds, no XLU, no narrow
    # stores in the hot loop.
    for c in range(n_classes):
        c0, c1 = c * _LANE, (c + 1) * _LANE
        p = exps[c] * inv_denom
        ohf = (tgt == c).astype(jnp.float32)
        if ragged:
            ohf = ohf * maskf
            p_sq = p * p * maskf
        else:
            p_sq = p * p
        i_acc[:, c0:c1] += p * ohf
        z_acc[:, c0:c1] += p_sq
        y_acc[:, c0:c1] += ohf

    # Epilogue (once per image): one sublane reduce per statistic and a single
    # lane-dense store.  The remaining tiny cross-lane/batch reduction is JAX glue.
    @pl.when(t == n_tiles - 1)
    def _finalize():
        ce_ref[0] = jnp.sum(ce_acc[...], axis=0, keepdims=True)   # (1, 128)
        i_ref[0] = jnp.sum(i_acc[...], axis=0, keepdims=True)     # (1, C*128)
        z_ref[0] = jnp.sum(z_acc[...], axis=0, keepdims=True)
        y_ref[0] = jnp.sum(y_acc[...], axis=0, keepdims=True)


def _single_head_loss(logits_nchw, target_nhw):
    """0.5 * DiceLoss(softmax=True) + 0.5 * CrossEntropyLoss for one head."""
    B, C, H, W = logits_nchw.shape
    n_pix = H * W

    rows = pl.cdiv(n_pix, _LANE)
    n_pad = rows * _LANE
    # Metadata-only reshapes: NCHW -> [B, C, rows, 128] / [B, rows, 128]
    # (no transpose of the logits tensor; batch becomes a grid axis).
    logits = logits_nchw.reshape(B, C, n_pix)
    target = target_nhw.astype(jnp.int32).reshape(B, n_pix)
    if n_pad != n_pix:   # rare: only when H*W is not a multiple of 128
        logits = jnp.pad(logits, ((0, 0), (0, 0), (0, n_pad - n_pix)))
        target = jnp.pad(target, ((0, 0), (0, n_pad - n_pix)))
    logits = logits.reshape(B, C, rows, _LANE)
    target = target.reshape(B, rows, _LANE)

    tile_r = _pick_tile_rows(C, rows)
    n_tiles = pl.cdiv(rows, tile_r)
    ragged = (n_tiles * tile_r * _LANE) != n_pix

    kernel = functools.partial(
        _seg_stats_kernel, n_classes=C, tile_r=tile_r,
        n_tiles=n_tiles, n_pix=n_pix, ragged=ragged)

    ce_o, i_o, z_o, y_o = pl.pallas_call(
        kernel,
        out_shape=(
            jax.ShapeDtypeStruct((B, 1, _LANE), jnp.float32),
            jax.ShapeDtypeStruct((B, 1, C * _LANE), jnp.float32),
            jax.ShapeDtypeStruct((B, 1, C * _LANE), jnp.float32),
            jax.ShapeDtypeStruct((B, 1, C * _LANE), jnp.float32),
        ),
        grid_spec=pltpu.PrefetchScalarGridSpec(
            num_scalar_prefetch=0,
            grid=(B, n_tiles),
            in_specs=[
                pl.BlockSpec((1, C, tile_r, _LANE), lambda b, t: (b, 0, t, 0)),
                pl.BlockSpec((1, tile_r, _LANE), lambda b, t: (b, t, 0)),
            ],
            out_specs=[
                pl.BlockSpec((1, 1, _LANE), lambda b, t: (b, 0, 0)),
                pl.BlockSpec((1, 1, C * _LANE), lambda b, t: (b, 0, 0)),
                pl.BlockSpec((1, 1, C * _LANE), lambda b, t: (b, 0, 0)),
                pl.BlockSpec((1, 1, C * _LANE), lambda b, t: (b, 0, 0)),
            ],
            scratch_shapes=[
                pltpu.VMEM((tile_r, _LANE), jnp.float32),
                pltpu.VMEM((tile_r, C * _LANE), jnp.float32),
                pltpu.VMEM((tile_r, C * _LANE), jnp.float32),
                pltpu.VMEM((tile_r, C * _LANE), jnp.float32),
            ],
        ),
        compiler_params=pltpu.CompilerParams(
            # batch axis feeds the 2nd TensorCore on v7x; the pixel-tile axis is
            # the sequential per-image reduction axis.
            dimension_semantics=("parallel", "arbitrary")),
    )(logits, target)

    ce_sum = jnp.sum(ce_o)
    intersect = jnp.sum(i_o.reshape(B, C, _LANE), axis=(0, 2))
    z_sum = jnp.sum(z_o.reshape(B, C, _LANE), axis=(0, 2))
    y_sum = jnp.sum(y_o.reshape(B, C, _LANE), axis=(0, 2))

    loss_ce = ce_sum / (B * n_pix)                         # CE 'mean' over all pixels
    dice_per_class = 1.0 - (2.0 * intersect + SMOOTH) / (z_sum + y_sum + SMOOTH)
    loss_dice = jnp.mean(dice_per_class)                   # average over classes
    # NOTE: no ignore_index handling (matches nn.CrossEntropyLoss default when all
    # target values are valid class indices, as in this module's usage).
    return 0.5 * loss_dice + 0.5 * loss_ce


def deep_supervision_loss(outputs, target, weights, num_classes):
    """Forward of DeepSupervisionLoss.

    outputs: [B,C,H,W] array or tuple of them; target: [B,H,W] integer class map.
    """
    del num_classes  # implied by the channel dimension of each head
    if not isinstance(outputs, (tuple, list)):
        return _single_head_loss(outputs, target)

    loss = weights[0] * _single_head_loss(outputs[0], target)
    # TODO(synk): same-resolution aux heads could be fused into a single pallas_call
    # (extra grid axis) to amortise launch + pipeline ramp cost for tiny heads.
    for i in range(1, len(outputs)):
        aux = outputs[i]
        if tuple(aux.shape[2:]) != tuple(target.shape[1:]):
            # F.interpolate(mode='bilinear', align_corners=False) equivalent for the
            # upsampled aux heads (half-pixel centres); resizing is glue, not hot path.
            B, C = aux.shape[0], aux.shape[1]
            aux = jax.image.resize(
                aux, (B, C) + tuple(target.shape[1:]), method="bilinear")
        loss = loss + weights[i] * _single_head_loss(aux, target)
    return loss


if __name__ == "__main__":
    key = jax.random.PRNGKey(0)
    k1, k2, k3, k4 = jax.random.split(key, 4)

    B, C, H, W = 2, 4, 16, 16
    # deep-supervision heads: main + two auxiliaries (one at half resolution)
    main_out = jax.random.normal(k1, (B, C, H, W), dtype=jnp.float32)
    aux1_out = jax.random.normal(k2, (B, C, H // 2, W // 2), dtype=jnp.float32)
    aux2_out = jax.random.normal(k3, (B, C, H, W), dtype=jnp.float32)
    target = jax.random.randint(k4, (B, H, W), 0, C).astype(jnp.int32)

    # deterministic deep-supervision weights (module __init__ argument)
    ds_weights = (1.0, 0.4, 0.2)

    loss = deep_supervision_loss((main_out, aux1_out, aux2_out),
                                 target, ds_weights, num_classes=C)
    jax.block_until_ready(loss)
    print("KERNEL_OK")
</pallas_src>

<mosaic_0001>
module attributes {stable_mosaic.version = 11 : i64} {
  func.func @_seg_stats_kernel(%arg0: i32, %arg1: i32, %arg2: memref<1x4x2x128xf32, #tpu.memory_space<vmem>>, %arg3: memref<1x2x128xi32, #tpu.memory_space<vmem>>, %arg4: memref<1x1x128xf32, #tpu.memory_space<vmem>>, %arg5: memref<1x1x512xf32, #tpu.memory_space<vmem>>, %arg6: memref<1x1x512xf32, #tpu.memory_space<vmem>>, %arg7: memref<1x1x512xf32, #tpu.memory_space<vmem>>, %arg8: memref<2x128xf32, #tpu.memory_space<vmem>>, %arg9: memref<2x512xf32, #tpu.memory_space<vmem>>, %arg10: memref<2x512xf32, #tpu.memory_space<vmem>>, %arg11: memref<2x512xf32, #tpu.memory_space<vmem>>) attributes {dimension_semantics = [#tpu.dimension_semantics<parallel>, #tpu.dimension_semantics<arbitrary>], iteration_bounds = array<i64: 2, 1>, scalar_prefetch = 0 : i64, scratch_operands = 4 : i64, tpu.core_type = #tpu.core_type<tc>, window_params = [{transform_indices = @transform_0, window_bounds = array<i64: 1, 4, 2, 128>}, {transform_indices = @transform_1, window_bounds = array<i64: 1, 2, 128>}, {transform_indices = @transform_2, window_bounds = array<i64: 1, 1, 128>}, {transform_indices = @transform_3, window_bounds = array<i64: 1, 1, 512>}, {transform_indices = @transform_4, window_bounds = array<i64: 1, 1, 512>}, {transform_indices = @transform_5, window_bounds = array<i64: 1, 1, 512>}]} {
    %c0_i32 = arith.constant 0 : i32
    %0 = arith.cmpi eq, %arg1, %c0_i32 : i32
    %1 = arith.extui %0 : i1 to i32
    %c0_i32_0 = arith.constant 0 : i32
    %2 = arith.cmpi ne, %1, %c0_i32_0 : i32
    scf.if %2 {
      %cst_72 = arith.constant 0.000000e+00 : f32
      %114 = vector.broadcast %cst_72 : f32 to vector<2x128xf32>
      %c0_73 = arith.constant 0 : index
      %c0_74 = arith.constant 0 : index
      %115 = vector.load %arg8[%c0_73, %c0_74] : memref<2x128xf32, #tpu.memory_space<vmem>>, vector<2x128xf32>
      tpu.vector_store %arg8[%c0_73, %c0_74], %114 {strides = array<i32>} : memref<2x128xf32, #tpu.memory_space<vmem>>, vector<2x128xf32>,
      %cst_75 = arith.constant 0.000000e+00 : f32
      %116 = vector.broadcast %cst_75 : f32 to vector<2x512xf32>
      %c0_76 = arith.constant 0 : index
      %c0_77 = arith.constant 0 : index
      %117 = vector.load %arg9[%c0_76, %c0_77] : memref<2x512xf32, #tpu.memory_space<vmem>>, vector<2x512xf32>
      tpu.vector_store %arg9[%c0_76, %c0_77], %116 {strides = array<i32>} : memref<2x512xf32, #tpu.memory_space<vmem>>, vector<2x512xf32>,
      %cst_78 = arith.constant 0.000000e+00 : f32
      %118 = vector.broadcast %cst_78 : f32 to vector<2x512xf32>
      %c0_79 = arith.constant 0 : index
      %c0_80 = arith.constant 0 : index
      %119 = vector.load %arg10[%c0_79, %c0_80] : memref<2x512xf32, #tpu.memory_space<vmem>>, vector<2x512xf32>
      tpu.vector_store %arg10[%c0_79, %c0_80], %118 {strides = array<i32>} : memref<2x512xf32, #tpu.memory_space<vmem>>, vector<2x512xf32>,
      %cst_81 = arith.constant 0.000000e+00 : f32
      %120 = vector.broadcast %cst_81 : f32 to vector<2x512xf32>
      %c0_82 = arith.constant 0 : index
      %c0_83 = arith.constant 0 : index
      %121 = vector.load %arg11[%c0_82, %c0_83] : memref<2x512xf32, #tpu.memory_space<vmem>>, vector<2x512xf32>
      tpu.vector_store %arg11[%c0_82, %c0_83], %120 {strides = array<i32>} : memref<2x512xf32, #tpu.memory_space<vmem>>, vector<2x512xf32>,
    } else {
    }
    %c0 = arith.constant 0 : index
    %c0_1 = arith.constant 0 : index
    %c0_2 = arith.constant 0 : index
    %3 = vector.load %arg3[%c0, %c0_1, %c0_2] : memref<1x2x128xi32, #tpu.memory_space<vmem>>, vector<1x2x128xi32>
    %4 = vector.shape_cast %3 : vector<1x2x128xi32> to vector<2x128xi32>
    %c0_3 = arith.constant 0 : index
    %c0_4 = arith.constant 0 : index
    %c0_5 = arith.constant 0 : index
    %c0_6 = arith.constant 0 : index
    %5 = vector.load %arg2[%c0_3, %c0_4, %c0_5, %c0_6] : memref<1x4x2x128xf32, #tpu.memory_space<vmem>>, vector<1x1x2x128xf32>
    %6 = vector.shape_cast %5 : vector<1x1x2x128xf32> to vector<2x128xf32>
    %c0_7 = arith.constant 0 : index
    %c1 = arith.constant 1 : index
    %c0_8 = arith.constant 0 : index
    %c0_9 = arith.constant 0 : index
    %7 = vector.load %arg2[%c0_7, %c1, %c0_8, %c0_9] : memref<1x4x2x128xf32, #tpu.memory_space<vmem>>, vector<1x1x2x128xf32>
    %8 = vector.shape_cast %7 : vector<1x1x2x128xf32> to vector<2x128xf32>
    %c0_10 = arith.constant 0 : index
    %c2 = arith.constant 2 : index
    %c0_11 = arith.constant 0 : index
    %c0_12 = arith.constant 0 : index
    %9 = vector.load %arg2[%c0_10, %c2, %c0_11, %c0_12] : memref<1x4x2x128xf32, #tpu.memory_space<vmem>>, vector<1x1x2x128xf32>
    %10 = vector.shape_cast %9 : vector<1x1x2x128xf32> to vector<2x128xf32>
    %c0_13 = arith.constant 0 : index
    %c3 = arith.constant 3 : index
    %c0_14 = arith.constant 0 : index
    %c0_15 = arith.constant 0 : index
    %11 = vector.load %arg2[%c0_13, %c3, %c0_14, %c0_15] : memref<1x4x2x128xf32, #tpu.memory_space<vmem>>, vector<1x1x2x128xf32>
    %12 = vector.shape_cast %11 : vector<1x1x2x128xf32> to vector<2x128xf32>
    %13 = arith.maximumf %6, %8 : vector<2x128xf32>
    %14 = arith.maximumf %13, %10 : vector<2x128xf32>
    %15 = arith.maximumf %14, %12 : vector<2x128xf32>
    %16 = arith.subf %6, %15 : vector<2x128xf32>
    %17 = math.exp %16 : vector<2x128xf32>
    %18 = arith.subf %8, %15 : vector<2x128xf32>
    %19 = math.exp %18 : vector<2x128xf32>
    %20 = arith.subf %10, %15 : vector<2x128xf32>
    %21 = math.exp %20 : vector<2x128xf32>
    %22 = arith.subf %12, %15 : vector<2x128xf32>
    %23 = math.exp %22 : vector<2x128xf32>
    %24 = arith.addf %17, %19 : vector<2x128xf32>
    %25 = arith.addf %24, %21 : vector<2x128xf32>
    %26 = arith.addf %25, %23 : vector<2x128xf32>
    %27 = tpu.reciprocal %26 : vector<2x128xf32> -> vector<2x128xf32>
    %28 = math.log %26 : vector<2x128xf32>
    %29 = arith.addf %28, %15 : vector<2x128xf32>
    %cst = arith.constant 0.000000e+00 : f32
    %30 = vector.broadcast %cst : f32 to vector<2x128xf32>
    %c0_i32_16 = arith.constant 0 : i32
    %31 = vector.broadcast %c0_i32_16 : i32 to vector<2x128xi32>
    %32 = arith.cmpi eq, %4, %31 : vector<2x128xi32>
    %33 = arith.select %32, %6, %30 : vector<2x128xi1>, vector<2x128xf32>
    %c1_i32 = arith.constant 1 : i32
    %34 = vector.broadcast %c1_i32 : i32 to vector<2x128xi32>
    %35 = arith.cmpi eq, %4, %34 : vector<2x128xi32>
    %36 = arith.select %35, %8, %33 : vector<2x128xi1>, vector<2x128xf32>
    %c2_i32 = arith.constant 2 : i32
    %37 = vector.broadcast %c2_i32 : i32 to vector<2x128xi32>
    %38 = arith.cmpi eq, %4, %37 : vector<2x128xi32>
    %39 = arith.select %38, %10, %36 : vector<2x128xi1>, vector<2x128xf32>
    %c3_i32 = arith.constant 3 : i32
    %40 = vector.broadcast %c3_i32 : i32 to vector<2x128xi32>
    %41 = arith.cmpi eq, %4, %40 : vector<2x128xi32>
    %42 = arith.select %41, %12, %39 : vector<2x128xi1>, vector<2x128xf32>
    %43 = arith.subf %29, %42 : vector<2x128xf32>
    %c0_17 = arith.constant 0 : index
    %c0_18 = arith.constant 0 : index
    %44 = vector.load %arg8[%c0_17, %c0_18] : memref<2x128xf32, #tpu.memory_space<vmem>>, vector<2x128xf32>
    %45 = arith.addf %44, %43 : vector<2x128xf32>
    %c0_19 = arith.constant 0 : index
    %c0_20 = arith.constant 0 : index
    %46 = vector.load %arg8[%c0_19, %c0_20] : memref<2x128xf32, #tpu.memory_space<vmem>>, vector<2x128xf32>
    tpu.vector_store %arg8[%c0_19, %c0_20], %45 {strides = array<i32>} : memref<2x128xf32, #tpu.memory_space<vmem>>, vector<2x128xf32>,
    %47 = arith.mulf %17, %27 : vector<2x128xf32>
    %c0_i32_21 = arith.constant 0 : i32
    %48 = vector.broadcast %c0_i32_21 : i32 to vector<2x128xi32>
    %49 = arith.cmpi eq, %4, %48 : vector<2x128xi32>
    %50 = arith.extui %49 : vector<2x128xi1> to vector<2x128xi32>
    %51 = arith.sitofp %50 : vector<2x128xi32> to vector<2x128xf32>
    %52 = arith.mulf %47, %47 : vector<2x128xf32>
    %c0_22 = arith.constant 0 : index
    %c0_23 = arith.constant 0 : index
    %53 = vector.load %arg9[%c0_22, %c0_23] : memref<2x512xf32, #tpu.memory_space<vmem>>, vector<2x128xf32>
    %54 = arith.mulf %47, %51 : vector<2x128xf32>
    %55 = arith.addf %53, %54 : vector<2x128xf32>
    %c0_24 = arith.constant 0 : index
    %c0_25 = arith.constant 0 : index
    %56 = vector.load %arg9[%c0_24, %c0_25] : memref<2x512xf32, #tpu.memory_space<vmem>>, vector<2x128xf32>
    tpu.vector_store %arg9[%c0_24, %c0_25], %55 {strides = array<i32>} : memref<2x512xf32, #tpu.memory_space<vmem>>, vector<2x128xf32>,
    %c0_26 = arith.constant 0 : index
    %c0_27 = arith.constant 0 : index
    %57 = vector.load %arg10[%c0_26, %c0_27] : memref<2x512xf32, #tpu.memory_space<vmem>>, vector<2x128xf32>
    %58 = arith.addf %57, %52 : vector<2x128xf32>
    %c0_28 = arith.constant 0 : index
    %c0_29 = arith.constant 0 : index
    %59 = vector.load %arg10[%c0_28, %c0_29] : memref<2x512xf32, #tpu.memory_space<vmem>>, vector<2x128xf32>
    tpu.vector_store %arg10[%c0_28, %c0_29], %58 {strides = array<i32>} : memref<2x512xf32, #tpu.memory_space<vmem>>, vector<2x128xf32>,
    %c0_30 = arith.constant 0 : index
    %c0_31 = arith.constant 0 : index
    %60 = vector.load %arg11[%c0_30, %c0_31] : memref<2x512xf32, #tpu.memory_space<vmem>>, vector<2x128xf32>
    %61 = arith.addf %60, %51 : vector<2x128xf32>
    %c0_32 = arith.constant 0 : index
    %c0_33 = arith.constant 0 : index
    %62 = vector.load %arg11[%c0_32, %c0_33] : memref<2x512xf32, #tpu.memory_space<vmem>>, vector<2x128xf32>
    tpu.vector_store %arg11[%c0_32, %c0_33], %61 {strides = array<i32>} : memref<2x512xf32, #tpu.memory_space<vmem>>, vector<2x128xf32>,
    %63 = arith.mulf %19, %27 : vector<2x128xf32>
    %c1_i32_34 = arith.constant 1 : i32
    %64 = vector.broadcast %c1_i32_34 : i32 to vector<2x128xi32>
    %65 = arith.cmpi eq, %4, %64 : vector<2x128xi32>
    %66 = arith.extui %65 : vector<2x128xi1> to vector<2x128xi32>
    %67 = arith.sitofp %66 : vector<2x128xi32> to vector<2x128xf32>
    %68 = arith.mulf %63, %63 : vector<2x128xf32>
    %c0_35 = arith.constant 0 : index
    %c128 = arith.constant 128 : index
    %69 = vector.load %arg9[%c0_35, %c128] : memref<2x512xf32, #tpu.memory_space<vmem>>, vector<2x128xf32>
    %70 = arith.mulf %63, %67 : vector<2x128xf32>
    %71 = arith.addf %69, %70 : vector<2x128xf32>
    %c0_36 = arith.constant 0 : index
    %c128_37 = arith.constant 128 : index
    %72 = vector.load %arg9[%c0_36, %c128_37] : memref<2x512xf32, #tpu.memory_space<vmem>>, vector<2x128xf32>
    tpu.vector_store %arg9[%c0_36, %c128_37], %71 {strides = array<i32>} : memref<2x512xf32, #tpu.memory_space<vmem>>, vector<2x128xf32>,
    %c0_38 = arith.constant 0 : index
    %c128_39 = arith.constant 128 : index
    %73 = vector.load %arg10[%c0_38, %c128_39] : memref<2x512xf32, #tpu.memory_space<vmem>>, vector<2x128xf32>
    %74 = arith.addf %73, %68 : vector<2x128xf32>
    %c0_40 = arith.constant 0 : index
    %c128_41 = arith.constant 128 : index
    %75 = vector.load %arg10[%c0_40, %c128_41] : memref<2x512xf32, #tpu.memory_space<vmem>>, vector<2x128xf32>
    tpu.vector_store %arg10[%c0_40, %c128_41], %74 {strides = array<i32>} : memref<2x512xf32, #tpu.memory_space<vmem>>, vector<2x128xf32>,
    %c0_42 = arith.constant 0 : index
    %c128_43 = arith.constant 128 : index
    %76 = vector.load %arg11[%c0_42, %c128_43] : memref<2x512xf32, #tpu.memory_space<vmem>>, vector<2x128xf32>
    %77 = arith.addf %76, %67 : vector<2x128xf32>
    %c0_44 = arith.constant 0 : index
    %c128_45 = arith.constant 128 : index
    %78 = vector.load %arg11[%c0_44, %c128_45] : memref<2x512xf32, #tpu.memory_space<vmem>>, vector<2x128xf32>
    tpu.vector_store %arg11[%c0_44, %c128_45], %77 {strides = array<i32>} : memref<2x512xf32, #tpu.memory_space<vmem>>, vector<2x128xf32>,
    %79 = arith.mulf %21, %27 : vector<2x128xf32>
    %c2_i32_46 = arith.constant 2 : i32
    %80 = vector.broadcast %c2_i32_46 : i32 to vector<2x128xi32>
    %81 = arith.cmpi eq, %4, %80 : vector<2x128xi32>
    %82 = arith.extui %81 : vector<2x128xi1> to vector<2x128xi32>
    %83 = arith.sitofp %82 : vector<2x128xi32> to vector<2x128xf32>
    %84 = arith.mulf %79, %79 : vector<2x128xf32>
    %c0_47 = arith.constant 0 : index
    %c256 = arith.constant 256 : index
    %85 = vector.load %arg9[%c0_47, %c256] : memref<2x512xf32, #tpu.memory_space<vmem>>, vector<2x128xf32>
    %86 = arith.mulf %79, %83 : vector<2x128xf32>
    %87 = arith.addf %85, %86 : vector<2x128xf32>
    %c0_48 = arith.constant 0 : index
    %c256_49 = arith.constant 256 : index
    %88 = vector.load %arg9[%c0_48, %c256_49] : memref<2x512xf32, #tpu.memory_space<vmem>>, vector<2x128xf32>
    tpu.vector_store %arg9[%c0_48, %c256_49], %87 {strides = array<i32>} : memref<2x512xf32, #tpu.memory_space<vmem>>, vector<2x128xf32>,
    %c0_50 = arith.constant 0 : index
    %c256_51 = arith.constant 256 : index
    %89 = vector.load %arg10[%c0_50, %c256_51] : memref<2x512xf32, #tpu.memory_space<vmem>>, vector<2x128xf32>
    %90 = arith.addf %89, %84 : vector<2x128xf32>
    %c0_52 = arith.constant 0 : index
    %c256_53 = arith.constant 256 : index
    %91 = vector.load %arg10[%c0_52, %c256_53] : memref<2x512xf32, #tpu.memory_space<vmem>>, vector<2x128xf32>
    tpu.vector_store %arg10[%c0_52, %c256_53], %90 {strides = array<i32>} : memref<2x512xf32, #tpu.memory_space<vmem>>, vector<2x128xf32>,
    %c0_54 = arith.constant 0 : index
    %c256_55 = arith.constant 256 : index
    %92 = vector.load %arg11[%c0_54, %c256_55] : memref<2x512xf32, #tpu.memory_space<vmem>>, vector<2x128xf32>
    %93 = arith.addf %92, %83 : vector<2x128xf32>
    %c0_56 = arith.constant 0 : index
    %c256_57 = arith.constant 256 : index
    %94 = vector.load %arg11[%c0_56, %c256_57] : memref<2x512xf32, #tpu.memory_space<vmem>>, vector<2x128xf32>
    tpu.vector_store %arg11[%c0_56, %c256_57], %93 {strides = array<i32>} : memref<2x512xf32, #tpu.memory_space<vmem>>, vector<2x128xf32>,
    %95 = arith.mulf %23, %27 : vector<2x128xf32>
    %c3_i32_58 = arith.constant 3 : i32
    %96 = vector.broadcast %c3_i32_58 : i32 to vector<2x128xi32>
    %97 = arith.cmpi eq, %4, %96 : vector<2x128xi32>
    %98 = arith.extui %97 : vector<2x128xi1> to vector<2x128xi32>
    %99 = arith.sitofp %98 : vector<2x128xi32> to vector<2x128xf32>
    %100 = arith.mulf %95, %95 : vector<2x128xf32>
    %c0_59 = arith.constant 0 : index
    %c384 = arith.constant 384 : index
    %101 = vector.load %arg9[%c0_59, %c384] : memref<2x512xf32, #tpu.memory_space<vmem>>, vector<2x128xf32>
    %102 = arith.mulf %95, %99 : vector<2x128xf32>
    %103 = arith.addf %101, %102 : vector<2x128xf32>
    %c0_60 = arith.constant 0 : index
    %c384_61 = arith.constant 384 : index
    %104 = vector.load %arg9[%c0_60, %c384_61] : memref<2x512xf32, #tpu.memory_space<vmem>>, vector<2x128xf32>
    tpu.vector_store %arg9[%c0_60, %c384_61], %103 {strides = array<i32>} : memref<2x512xf32, #tpu.memory_space<vmem>>, vector<2x128xf32>,
    %c0_62 = arith.constant 0 : index
    %c384_63 = arith.constant 384 : index
    %105 = vector.load %arg10[%c0_62, %c384_63] : memref<2x512xf32, #tpu.memory_space<vmem>>, vector<2x128xf32>
    %106 = arith.addf %105, %100 : vector<2x128xf32>
    %c0_64 = arith.constant 0 : index
    %c384_65 = arith.constant 384 : index
    %107 = vector.load %arg10[%c0_64, %c384_65] : memref<2x512xf32, #tpu.memory_space<vmem>>, vector<2x128xf32>
    tpu.vector_store %arg10[%c0_64, %c384_65], %106 {strides = array<i32>} : memref<2x512xf32, #tpu.memory_space<vmem>>, vector<2x128xf32>,
    %c0_66 = arith.constant 0 : index
    %c384_67 = arith.constant 384 : index
    %108 = vector.load %arg11[%c0_66, %c384_67] : memref<2x512xf32, #tpu.memory_space<vmem>>, vector<2x128xf32>
    %109 = arith.addf %108, %99 : vector<2x128xf32>
    %c0_68 = arith.constant 0 : index
    %c384_69 = arith.constant 384 : index
    %110 = vector.load %arg11[%c0_68, %c384_69] : memref<2x512xf32, #tpu.memory_space<vmem>>, vector<2x128xf32>
    tpu.vector_store %arg11[%c0_68, %c384_69], %109 {strides = array<i32>} : memref<2x512xf32, #tpu.memory_space<vmem>>, vector<2x128xf32>,
    %c0_i32_70 = arith.constant 0 : i32
    %111 = arith.cmpi eq, %arg1, %c0_i32_70 : i32
    %112 = arith.extui %111 : i1 to i32
    %c0_i32_71 = arith.constant 0 : i32
    %113 = arith.cmpi ne, %112, %c0_i32_71 : i32
    scf.if %113 {
      %c0_72 = arith.constant 0 : index
      %c0_73 = arith.constant 0 : index
      %114 = vector.load %arg8[%c0_72, %c0_73] : memref<2x128xf32, #tpu.memory_space<vmem>>, vector<2x128xf32>
      %cst_74 = arith.constant dense<0.000000e+00> : vector<128xf32>
      %115 = vector.multi_reduction <add>, %114, %cst_74 [0] : vector<2x128xf32> to vector<128xf32>
      %116 = vector.shape_cast %115 : vector<128xf32> to vector<1x128xf32>
      %c0_75 = arith.constant 0 : index
      %c0_76 = arith.constant 0 : index
      %c0_77 = arith.constant 0 : index
      %117 = vector.load %arg4[%c0_75, %c0_76, %c0_77] : memref<1x1x128xf32, #tpu.memory_space<vmem>>, vector<1x1x128xf32>
      %118 = vector.shape_cast %117 : vector<1x1x128xf32> to vector<1x128xf32>
      %119 = vector.shape_cast %116 : vector<1x128xf32> to vector<1x1x128xf32>
      tpu.vector_store %arg4[%c0_75, %c0_76, %c0_77], %119 {strides = array<i32>} : memref<1x1x128xf32, #tpu.memory_space<vmem>>, vector<1x1x128xf32>,
      %c0_78 = arith.constant 0 : index
      %c0_79 = arith.constant 0 : index
      %120 = vector.load %arg9[%c0_78, %c0_79] : memref<2x512xf32, #tpu.memory_space<vmem>>, vector<2x512xf32>
      %cst_80 = arith.constant dense<0.000000e+00> : vector<512xf32>
      %121 = vector.multi_reduction <add>, %120, %cst_80 [0] : vector<2x512xf32> to vector<512xf32>
      %122 = vector.shape_cast %121 : vector<512xf32> to vector<1x512xf32>
      %c0_81 = arith.constant 0 : index
      %c0_82 = arith.constant 0 : index
      %c0_83 = arith.constant 0 : index
      %123 = vector.load %arg5[%c0_81, %c0_82, %c0_83] : memref<1x1x512xf32, #tpu.memory_space<vmem>>, vector<1x1x512xf32>
      %124 = vector.shape_cast %123 : vector<1x1x512xf32> to vector<1x512xf32>
      %125 = vector.shape_cast %122 : vector<1x512xf32> to vector<1x1x512xf32>
      tpu.vector_store %arg5[%c0_81, %c0_82, %c0_83], %125 {strides = array<i32>} : memref<1x1x512xf32, #tpu.memory_space<vmem>>, vector<1x1x512xf32>,
      %c0_84 = arith.constant 0 : index
      %c0_85 = arith.constant 0 : index
      %126 = vector.load %arg10[%c0_84, %c0_85] : memref<2x512xf32, #tpu.memory_space<vmem>>, vector<2x512xf32>
      %cst_86 = arith.constant dense<0.000000e+00> : vector<512xf32>
      %127 = vector.multi_reduction <add>, %126, %cst_86 [0] : vector<2x512xf32> to vector<512xf32>
      %128 = vector.shape_cast %127 : vector<512xf32> to vector<1x512xf32>
      %c0_87 = arith.constant 0 : index
      %c0_88 = arith.constant 0 : index
      %c0_89 = arith.constant 0 : index
      %129 = vector.load %arg6[%c0_87, %c0_88, %c0_89] : memref<1x1x512xf32, #tpu.memory_space<vmem>>, vector<1x1x512xf32>
      %130 = vector.shape_cast %129 : vector<1x1x512xf32> to vector<1x512xf32>
      %131 = vector.shape_cast %128 : vector<1x512xf32> to vector<1x1x512xf32>
      tpu.vector_store %arg6[%c0_87, %c0_88, %c0_89], %131 {strides = array<i32>} : memref<1x1x512xf32, #tpu.memory_space<vmem>>, vector<1x1x512xf32>,
      %c0_90 = arith.constant 0 : index
      %c0_91 = arith.constant 0 : index
      %132 = vector.load %arg11[%c0_90, %c0_91] : memref<2x512xf32, #tpu.memory_space<vmem>>, vector<2x512xf32>
      %cst_92 = arith.constant dense<0.000000e+00> : vector<512xf32>
      %133 = vector.multi_reduction <add>, %132, %cst_92 [0] : vector<2x512xf32> to vector<512xf32>
      %134 = vector.shape_cast %133 : vector<512xf32> to vector<1x512xf32>
      %c0_93 = arith.constant 0 : index
      %c0_94 = arith.constant 0 : index
      %c0_95 = arith.constant 0 : index
      %135 = vector.load %arg7[%c0_93, %c0_94, %c0_95] : memref<1x1x512xf32, #tpu.memory_space<vmem>>, vector<1x1x512xf32>
      %136 = vector.shape_cast %135 : vector<1x1x512xf32> to vector<1x512xf32>
      %137 = vector.shape_cast %134 : vector<1x512xf32> to vector<1x1x512xf32>
      tpu.vector_store %arg7[%c0_93, %c0_94, %c0_95], %137 {strides = array<i32>} : memref<1x1x512xf32, #tpu.memory_space<vmem>>, vector<1x1x512xf32>,
    } else {
    }
    return
  }
  func.func @transform_0(%arg0: i32, %arg1: i32) -> (i32, i32, i32, i32) {
    %c0_i32 = arith.constant 0 : i32
    %c0_i32_0 = arith.constant 0 : i32
    %c0_i32_1 = arith.constant 0 : i32
    return %arg0, %c0_i32, %arg1, %c0_i32_0 : i32, i32, i32, i32
  }
  func.func @transform_1(%arg0: i32, %arg1: i32) -> (i32, i32, i32) {
    %c0_i32 = arith.constant 0 : i32
    %c0_i32_0 = arith.constant 0 : i32
    return %arg0, %arg1, %c0_i32 : i32, i32, i32
  }
  func.func @transform_2(%arg0: i32, %arg1: i32) -> (i32, i32, i32) {
    %c0_i32 = arith.constant 0 : i32
    %c0_i32_0 = arith.constant 0 : i32
    %c0_i32_1 = arith.constant 0 : i32
    return %arg0, %c0_i32, %c0_i32_0 : i32, i32, i32
  }
  func.func @transform_3(%arg0: i32, %arg1: i32) -> (i32, i32, i32) {
    %c0_i32 = arith.constant 0 : i32
    %c0_i32_0 = arith.constant 0 : i32
    %c0_i32_1 = arith.constant 0 : i32
    return %arg0, %c0_i32, %c0_i32_0 : i32, i32, i32
  }
  func.func @transform_4(%arg0: i32, %arg1: i32) -> (i32, i32, i32) {
    %c0_i32 = arith.constant 0 : i32
    %c0_i32_0 = arith.constant 0 : i32
    %c0_i32_1 = arith.constant 0 : i32
    return %arg0, %c0_i32, %c0_i32_0 : i32, i32, i32
  }
  func.func @transform_5(%arg0: i32, %arg1: i32) -> (i32, i32, i32) {
    %c0_i32 = arith.constant 0 : i32
    %c0_i32_0 = arith.constant 0 : i32
    %c0_i32_1 = arith.constant 0 : i32
    return %arg0, %c0_i32, %c0_i32_0 : i32, i32, i32
  }
}

</mosaic_0001>

<bundles_post_ra>
// kernel: tpu_custom_call.1
= control target key start
LH: loop header
LB: loop body
LE: loop exit
PB: predicated region body
PF: predicated region fallthrough
CT: control target
= control target key end

     0   :  { %s1752_s0 = inlined_call_operand.hbm [shape: f32[2,4,2,128], index: 0, kind: input, shape index: {}]   ;;  %s1753_s1 = inlined_call_operand.hbm [shape: s32[2,2,128], index: 1, kind: input, shape index: {}]   ;;  %s1754_s2 = inlined_call_operand.hbm [shape: f32[2,1,128], index: 2, kind: output, shape index: {0}]   ;;  %s1755_s3 = inlined_call_operand.hbm [shape: f32[2,1,512], index: 3, kind: output, shape index: {1}]   ;;  %s1756_s4 = inlined_call_operand.hbm [shape: f32[2,1,512], index: 4, kind: output, shape index: {2}]   ;;  %s1757_s5 = inlined_call_operand.hbm [shape: f32[2,1,512], index: 5, kind: output, shape index: {3}]  }
   0x1   :  { %1761 = sst [smem:[#allocation25_spill]] %s1752_s0 }
   0x2   :  { %11 = vsyncpa [#allocation7], 0 }
   0x3   :  { %13 = vsyncpa [#allocation7 + $0x1], 0 }
   0x4   :  { %14 = vsyncpa [#allocation10], 0 }
   0x5   :  { %16 = vsyncpa [#allocation10 + $0x1], 0 }
   0x6   :  { %17 = vsyncpa [#allocation8], 0 }
   0x7   :  { %19 = vsyncpa [#allocation8 + $0x1], 0 }
   0x8   :  { %20 = vsyncpa [#allocation13], 0 }
   0x9   :  { %22 = vsyncpa [#allocation13 + $0x1], 0 }
   0xa   :  { %23 = vsyncpa [#allocation16], 0 }
   0xb   :  { %25 = vsyncpa [#allocation16 + $0x1], 0  ;;  %s1363_s18 = smov 0   ;;  %s1365_s19 = smov 0  }
   0xc   :  { %s1367_s20 = smov 0   ;;  %s1369_s21 = smov 0  }
   0xd   :  { %s1371_s22 = smov 0   ;;  %s1373_s23 = smov 0  }
   0xe LB: > { %1762 = sst [smem:[#allocation22_spill]] %s1308_s20  ;;  %s1394_s24 = sadd.s32 4294967295, %s1320_s23   ;;  %s1320_s23 = sphi %s1373_s23, %s31_s23   ;;  %s1316_s22 = sphi %s1371_s22, %s1782_s22   ;;  %s1312_s21 = sphi %s1369_s21, %s1781_s21   ;;  %s1308_s20 = sphi %s1367_s20, %s1777_s20   ;;  %s1304_s19 = sphi %s1365_s19, %s1780_s19   ;;  %s1300_s18 = sphi %s1363_s18, %s1779_s18  }
   0xf   : > { %s1758_s25 = sadd.s32 4294967294, %s1320_s23   ;;  %s43_s26 = sadd.s32 1, %s1316_s22 }
  0x10   : > { %s52_s27 = sadd.s32 1, %s1308_s20  ;;  %p45_p0 = scmp.ge.s32.totalorder %s43_s26, 2 }
  0x11   : > { %p59_p1 = scmp.ne.s32.totalorder %s1308_s20, %s1304_s19  ;;  %p60_p2 = scmp.eq.s32.totalorder %s1320_s23, 0 }
  0x12   : > { %p65_p3 = scmp.ne.s32.totalorder %s1304_s19, %s1300_s18  ;;  %s1784_s26 = smov (%p45_p0, %s43_s26), 0 }
  0x13   : > { %1763 = sst [smem:[#allocation23_spill]] %s1784_s26  ;;  %p1406_p4 = por %p60_p2, %p59_p1 }
  0x14   : > { %p66_p5 = scmp.eq.s32.totalorder %s1394_s24, 0  ;;  %s47_s29 = ssub.s32 %s1316_s22, %s1784_s26 }
  0x15   : > { %p117_p6 = scmp.eq.s32.totalorder %s1394_s24, 1  ;;  %p50_p7 = scmp.eq.s32.totalorder %s47_s29, 0 }
  0x16   : > { %p1414_p8 = por %p66_p5, %p65_p3  ;;  %p123_p10 = scmp.eq.s32.totalorder %s1758_s25, 1 }
  0x17   : > { %p1418_p9 = por %p117_p6, %p59_p1  ;;  %p1024_p13 = scmp.lt.s32.totalorder %s1320_s23, 2 }
  0x18   : > { %s1425_s7 = scalar_select %p50_p7, %s1308_s20, %s52_s27  }
  0x19   : > { %p1427_p11 = por %p123_p10, %p65_p3  ;;  %s1434_s9 = sand.u32 1, %s1308_s20  }
  0x1a   : > { %1767 = sst [smem:[#allocation24_spill]] %s1425_s7  ;;  %s958_s10 = sshll.u32 %s1434_s9, 3 }
  0x1b   : > { %s988_s11 = sshll.u32 %s1316_s22, 7  ;;  %s1769_s0 = sld [smem:[#allocation25_spill]] }
  0x1c   : > { %s225_s15 = scalar_lea.vmem [#allocation6], %s958_s10  ;;  %p1443_p0 = pnand %p1024_p13, %p1406_p4 }
  0x1d   : > { %s233_s16 = sshll.u32 %s225_s15, 4  ;;  %p963_p1 = scmp.ge.s32.totalorder %s1320_s23, 1  ;;  %s234_s16 = int_to_ptr.vmem [resolvable:$true] %s233_s16 }
  0x1e   : > { %s222_s27 = scalar_lea.sflag [#allocation7], %s1434_s9  ;;  %p1096_p2 = pneg %p1443_p0 }
  0x1f   : > { %s1107_s29 = scalar_lea.vmem %s234_s16, 128  ;;  %s1322_s10 = smov [#allocation6]  }
  0x20   : > { %p1108_p3 = scmp.ne.s32.totalorder %s234_s16, %s1107_s29 }
  0x21   : > { %s232_s14 = scalar_lea.hbm %s1769_s0, %s988_s11  ;;  %s1112_s11 = sshll.u32 %s1322_s10, 4  ;;  %s1113_s11 = int_to_ptr.vmem [resolvable:$false] %s1112_s11 }
  0x22   : > { %p1110_p5 = pnand %p1108_p3, %p1096_p2  ;;  %s1114_s28 = scalar_lea.vmem %s1113_s11, 256 }
  0x23   : > { %p1115_p4 = scmp.lt.s32.totalorder %s234_s16, %s1113_s11  ;;  %p1116_p7 = scmp.lt.s32.totalorder %s1114_s28, %s1107_s29 }
  0x24   : > { %p1111_p6 = pneg %p1110_p5 }
  0x25   : > { %p1117_p10 = por %p1116_p7, %p1115_p4 }
  0x27   : > { %p1118_p13 = pnand %p1117_p10, %p1111_p6 }
  0x29   : > { %1121 = shalt.err (!%p1118_p13)
}
  0x2a   : > { %s1323_s12 = smov 32   ;;  %s1324_s13 = smov 2  }
  0x2b   : > { %1007 = dma.hbm_to_vmem [thread:$0]  (!%p1443_p0), %s232_s14, 128, %s234_s16, %s222_s27, %s1323_s12, %s1323_s12, %s1324_s13  }
  0x2c   : > { %p260_p3 = scmp.lt.s32.totalorder %s1320_s23, 3  ;;  %s961_s15 = sshll.u32 %s1434_s9, 1 }
  0x2d   : > { %s962_s10 = sshll.u32 %s1316_s22, 5  ;;  %s247_s0 = scalar_lea.vmem [#allocation9], %s961_s15 }
  0x2e   : > { %p1461_p5 = pnand %p963_p1, %p260_p3  ;;  %s253_s25 = scalar_lea.hbm %s1753_s1, %s962_s10 }
  0x2f   : > { %s255_s26 = sshll.u32 %s247_s0, 4  ;;  %s244_s7 = scalar_lea.sflag [#allocation10], %s1434_s9  ;;  %s256_s26 = int_to_ptr.vmem [resolvable:$true] %s255_s26 }
  0x30   : > { %s1135_s20 = scalar_lea.vmem %s256_s26, 32  ;;  %s1325_s14 = smov [#allocation9]  }
  0x31   : > { %p1136_p6 = scmp.ne.s32.totalorder %s256_s26, %s1135_s20  ;;  %s1140_s16 = sshll.u32 %s1325_s14, 4  ;;  %s1141_s16 = int_to_ptr.vmem [resolvable:$false] %s1140_s16 }
  0x32   : > { %s1142_s27 = scalar_lea.vmem %s1141_s16, 64  ;;  %p1143_p1 = scmp.lt.s32.totalorder %s256_s26, %s1141_s16 }
  0x33   : > { %p1138_p4 = pnand %p1136_p6, %p1096_p2  ;;  %p1144_p10 = scmp.lt.s32.totalorder %s1142_s27, %s1135_s20 }
  0x35   : > { %p1139_p7 = pneg %p1138_p4  ;;  %p1145_p13 = por %p1144_p10, %p1143_p1 }
  0x37   : > { %p1146_p3 = pnand %p1145_p13, %p1139_p7 }
  0x39   : > { %1149 = shalt.err (!%p1146_p3)
}
  0x3a   : > { %1010 = dma.hbm_to_vmem [thread:$0]  (!%p1443_p0), %s253_s25, 32, %s256_s26, %s244_s7  }
  0x3b   : > { %264 = sbr.rel (%p1461_p5) target bundleno = 224 (0xe0), region = 28  ;;  %s1477_s0 = sand.u32 (!%p1461_p5), 1, %s1304_s19  }
  0x3c   : > { %s964_s9 = sshll.u32 (!%p1461_p5), %s1477_s0, 3  ;;  %s267_s12 = scalar_lea.sflag (!%p1461_p5), [#allocation7], %s1477_s0 }
  0x3d   : > { %s270_s13 = scalar_lea.vmem (!%p1461_p5), [#allocation6], %s964_s9 }
  0x40   : > { %1279 = dma.done.wait (%p1414_p8), %s267_s12, 128  }
  0x41   : > { %1281 = vsyncadd (%p1414_p8), %s267_s12, 4294967168  ;;  %s965_s20 = sshll.u32 %s1477_s0, 1  ;;  %s276_s25 = scalar_lea.sflag [#allocation10], %s1477_s0 }
  0x42   : > { %s279_s26 = scalar_lea.vmem [#allocation9], %s965_s20 }
  0x43   : > { %1283 = dma.done.wait (%p1414_p8), %s276_s25, 32  }
  0x44   : > { %1285 = vsyncadd (%p1414_p8), %s276_s25, 4294967264  ;;  %v1326_v0 = vmov 0.0   ;;  %v1491_v1 = vld [vmem:[%s279_s26] sm:$0x3]  ;;  %v1493_v2 = vld [vmem:[%s270_s13] sm:$0x3]  ;;  %v450_v19 = vlaneseq }
  0x45   : > { %332 = vst [vmem:[#allocation5] sm:$0xff] %v1326_v0  ;;  %329 = vst [vmem:[#allocation2] sm:$0x3] %v1326_v0  ;;  %v1495_v3 = vld [vmem:[%s270_s13 + $0x2] sm:$0x3]  ;;  %vm363_vm0 = vcmp.eq.s32.totalorder %v1491_v1, 0 }
  0x46   : > { %330 = vst [vmem:[#allocation3] sm:$0xff] %v1326_v0  ;;  %331 = vst [vmem:[#allocation4] sm:$0xff] %v1326_v0  ;;  %v341_v5 = vmax.f32 %v1493_v2, %v1495_v3  ;;  %vm365_vm1 = vcmp.eq.s32.totalorder %v1491_v1, 1  ;;  %v1503_v7 = vsel %vm363_vm0, 1.0, %v1326_v0  ;;  %v1509_v9 = vld [vmem:[%s270_s13 + $0x4] sm:$0x3] }
  0x47   : > { %v1507_v8 = vsel %vm365_vm1, 1.0, %v1326_v0  ;;  %vm367_vm2 = vcmp.eq.s32.totalorder %v1491_v1, 2  ;;  %v1514_v12 = vld [vmem:[%s270_s13 + $0x6] sm:$0x3]  ;;  %vm369_vm3 = vcmp.eq.s32.totalorder %v1491_v1, 3  ;;  %v451_v29 = vshrl.u32 %v450_v19, 7 }
  0x48   : > { %v342_v13 = vmax.f32 %v341_v5, %v1509_v9  ;;  %v1519_v16 = vsel %vm367_vm2, 1.0, %v1326_v0  ;;  %v1327_v17 = vmov 1983009808   ;;  %v1528_v22 = vsel %vm369_vm3, 1.0, %v1326_v0  ;;  %s1563_s30 = sshll.u32 %s1477_s0, 2  ;;  %s1569_s15 = sshll.u32 %s1312_s21, 6 }
  0x49   : > { %v448_v18 = vunpack.c.l.s4 %v1327_v17  ;;  %vm435_vm4 = vcmask 1041408   ;;  %v1328_v48 = vmov 1966171168   ;;  %s324_s7 = scalar_lea.vmem [#allocation15], %s1563_s30  ;;  %vm1575_vm5 = vcmp.lt.s32.totalorder %v450_v19, 512  ;;  %s759_s11 = scalar_lea.hbm %s1757_s5, %s1569_s15 }
  0x4a   : > { %v1523_v20 = vmax.f32 %v342_v13, %v1514_v12  ;;  %v502_v49 = vunpack.c.l.s4 %v1328_v48  ;;  %s761_s17 = sshll.u32 %s324_s7, 4  ;;  %s706_s28 = scalar_lea.sflag [#allocation16], %s1477_s0  ;;  %s1579_s17 = int_to_ptr.vmem [resolvable:$true] %s761_s17 }
  0x4b   : > { %v449_v28 = vunpack.c.0.s8 %v448_v18  ;;  %s1150_s14 = scalar_lea.vmem %s1579_s17, 64  ;;  %s1329_s16 = smov [#allocation15]  }
  0x4c   : > { %v386_v4 = vld [vmem:[#allocation5] sm:$0x3]  ;;  %v400_v6 = vld [vmem:[#allocation5 + $0x2] sm:$0x3]  ;;  %v414_v14 = vld [vmem:[#allocation5 + $0x4] sm:$0x3]  ;;  %v347_v24 = vsub.f32 %v1495_v3, %v1523_v20  ;;  %v350_v25 = vsub.f32 %v1509_v9, %v1523_v20  ;;  %v344_v26 = vsub.f32 %v1493_v2, %v1523_v20  ;;  %v353_v27 = vsub.f32 %v1514_v12, %v1523_v20  ;;  %p1151_p8 = scmp.ne.s32.totalorder %s1579_s17, %s1150_s14 }
  0x4d   : > { %v387_v10 = vadd.f32 %v1503_v7, %v386_v4  ;;  %v401_v11 = vadd.f32 %v1507_v8, %v400_v6  ;;  %v428_v15 = vld [vmem:[#allocation5 + $0x6] sm:$0x3]  ;;  %v415_v21 = vadd.f32 %v1519_v16, %v414_v14  ;;  %v1540_v34 = vsub.s32 %v449_v28, %v451_v29  ;;  %s1154_s27 = sshll.u32 %s1329_s16, 4  ;;  %s1155_s27 = int_to_ptr.vmem [resolvable:$false] %s1154_s27 }
  0x4e   : > { %v429_v23 = vadd.f32 %v1528_v22, %v428_v15  ;;  %v348_v30 = vmul.f32 1.442695, %v347_v24  ;;  %v351_v31 = vmul.f32 1.442695, %v350_v25  ;;  %v345_v32 = vmul.f32 1.442695, %v344_v26  ;;  %p1152_p0 = pnand %p1151_p8, %p1418_p9  ;;  %p1157_p5 = scmp.lt.s32.totalorder %s1579_s17, %s1155_s27 }
  0x4f   : > { %388 = vst [vmem:[#allocation5] sm:$0x3] %v387_v10  ;;  %402 = vst [vmem:[#allocation5 + $0x2] sm:$0x3] %v401_v11  ;;  %v354_v33 = vmul.f32 1.442695, %v353_v27  ;;  %v503_v61 = vunpack.c.0.s8 %v502_v49 }
  0x50   : > { %416 = vst [vmem:[#allocation5 + $0x4] sm:$0x3] %v415_v21  ;;  %430 = vst [vmem:[#allocation5 + $0x6] sm:$0x3] %v429_v23  ;;  %1082 = vpow2.f32 %v348_v30  ;;  %p1153_p2 = pneg %p1152_p0  ;;  %s1156_s9 = scalar_lea.vmem %s1155_s27, 128 }
  0x51   : > { %1084 = vpow2.f32 %v351_v31  ;;  %v1559_v18 = vsub.s32 %v503_v61, %v451_v29  ;;  %p1158_p6 = scmp.lt.s32.totalorder %s1156_s9, %s1150_s14 }
  0x52   : > { %1086 = vpow2.f32 %v345_v32  ;;  %v364_v32 = vsel %vm363_vm0, %v1493_v2, 0.0 }
  0x53   : > { %1088 = vpow2.f32 %v354_v33  ;;  %v366_v2 = vsel %vm365_vm1, %v1495_v3, %v364_v32  ;;  %p1159_p4 = por %p1158_p6, %p1157_p5 }
  0x55   : > { %p1160_p7 = pnand %p1159_p4, %p1153_p2 }
  0x57   : > { %v610_v35 = vld [vmem:[#allocation5] sm:$0xff] }
  0x58   : > { %v612_v36 = vcombine.high %v610_v35, %v610_v35  ;;  %v619_v37 = vrot.slane %v610_v35, %v1540_v34 }
  0x5a   : > { %v626_v38 = vrot.slane %v612_v36, %v1540_v34  ;;  %v627_v39 = vcombine.high %v619_v37, %v619_v37  ;;  %v633_v40 = vsel %vm435_vm4, %v619_v37, 0.0 }
  0x5b   : > { %v634_v41 = vrot.slane %v633_v40, 4 }
  0x5c   : > { %v628_v42 = vcombine.high %v626_v38, %v626_v38  ;;  %v640_v43 = vsel %vm435_vm4, %v627_v39, 0.0  ;;  %v647_v44 = vsel %vm435_vm4, %v626_v38, 0.0 }
  0x5d   : > { %v635_v45 = vadd.f32 %v634_v41, %v633_v40  ;;  %v641_v46 = vrot.slane %v640_v43, 4  ;;  %v648_v47 = vrot.slane %v647_v44, 4  ;;  %v1548_v55 = vpop.eup %1082 }
  0x5e   : > { %v654_v50 = vsel %vm435_vm4, %v628_v42, 0.0  ;;  %v1550_v60 = vpop.eup %1084 }
  0x5f   : > { %v636_v51 = vrot.slane %v635_v45, 2  ;;  %v642_v52 = vadd.f32 %v641_v46, %v640_v43  ;;  %v649_v53 = vadd.f32 %v648_v47, %v647_v44  ;;  %v655_v54 = vrot.slane %v654_v50, 4  ;;  %v1552_v62 = vpop.eup %1086 }
  0x60   : > { %v356_v6 = vadd.f32 %v1552_v62, %v1548_v55  ;;  %v1556_v10 = vpop.eup %1088 }
  0x61   : > { %v637_v56 = vadd.f32 %v636_v51, %v635_v45  ;;  %v643_v57 = vrot.slane %v642_v52, 2  ;;  %v650_v58 = vrot.slane %v649_v53, 2  ;;  %v656_v59 = vadd.f32 %v655_v54, %v654_v50 }
  0x62   : > { %v357_v17 = vadd.f32 %v1550_v60, %v356_v6 }
  0x63   : > { %v638_v63 = vrot.slane %v637_v56, 1  ;;  %v644_v0 = vadd.f32 %v643_v57, %v642_v52  ;;  %v651_v4 = vadd.f32 %v650_v58, %v649_v53  ;;  %v657_v5 = vrot.slane %v656_v59, 2 }
  0x64   : > { %v358_v25 = vadd.f32 %v1556_v10, %v357_v17 }
  0x65   : > { %v639_v11 = vadd.f32 %v638_v63, %v637_v56  ;;  %v645_v13 = vrot.slane %v644_v0, 1  ;;  %v652_v14 = vrot.slane %v651_v4, 1  ;;  %v658_v15 = vadd.f32 %v657_v5, %v656_v59 }
  0x66   : > { %1090 = vrcp.f32 %v358_v25 }
  0x67   : > { %v646_v21 = vadd.f32 %v645_v13, %v644_v0  ;;  %v653_v23 = vadd.f32 %v652_v14, %v651_v4  ;;  %v659_v24 = vrot.slane %v658_v15, 1  ;;  %1092 = vlog2.f32 %v358_v25 }
  0x69   : > { %v660_v26 = vadd.f32 %v659_v24, %v658_v15  ;;  %v665_v27 = vcombine.low %v639_v11, %v646_v21 }
  0x6b   : > { %v666_v28 = vcombine.low %v653_v23, %v660_v26  ;;  %v673_v30 = vrot.slane %v665_v27, %v1559_v18 }
  0x6d   : > { %v680_v29 = vrot.slane %v666_v28, %v1559_v18 }
  0x6f   : > { %v681_v31 = vcombine.low %v673_v30, %v680_v29 }
  0x71   : > { %v688_v35 = vrot.slane %v681_v31, %v1559_v18 }
  0x73   : > { %690 = vst.msk [vmem:[%s324_s7] sm:$0xf] %vm1575_vm5, %v688_v35 }
  0x74   : > { %1163 = shalt.err (!%p1160_p7)
}
  0x75   : > { %s1164_s12 = scalar_lea.hbm %s759_s11, 64  ;;  %s1168_s25 = scalar_lea.hbm %s1757_s5, 128 }
  0x76   : > { %p1165_p1 = scmp.ne.s32.totalorder %s759_s11, %s1164_s12  ;;  %p1169_p3 = scmp.lt.s32.totalorder %s759_s11, %s1757_s5 }
  0x77   : > { %p1170_p8 = scmp.lt.s32.totalorder %s1168_s25, %s1164_s12 }
  0x78   : > { %p1166_p10 = pnand %p1165_p1, %p1418_p9 }
  0x79   : > { %p1171_p0 = por %p1170_p8, %p1169_p3 }
  0x7a   : > { %p1167_p13 = pneg %p1166_p10 }
  0x7c   : > { %p1172_p12 = pnand %p1171_p0, %p1167_p13 }
  0x7e   : > { %1175 = shalt.err (!%p1172_p12)
}
  0x7f   : > { %999 = dma.vmem_to_hbm [thread:$0]  (%p1418_p9), %s1579_s17, 64, %s759_s11, %s706_s28   ;;  %v368_v3 = vsel %vm367_vm2, %v1509_v9, %v366_v2  ;;  %v1091_v19 = vpop.eup %1090  ;;  %v379_v38 = vld [vmem:[#allocation3] sm:$0x3]  ;;  %v383_v39 = vld [vmem:[#allocation4] sm:$0x3] }
  0x80   : > { %v1093_v36 = vpop.eup %1092  ;;  %v375_v37 = vmul.f32 %v1091_v19, %v1552_v62  ;;  %v389_v40 = vmul.f32 %v1091_v19, %v1548_v55  ;;  %v393_v41 = vld [vmem:[#allocation3 + $0x2] sm:$0x3]  ;;  %v403_v42 = vmul.f32 %v1091_v19, %v1550_v60  ;;  %v417_v43 = vmul.f32 %v1091_v19, %v1556_v10  ;;  %v397_v44 = vld [vmem:[#allocation4 + $0x2] sm:$0x3]  ;;  %v407_v45 = vld [vmem:[#allocation3 + $0x4] sm:$0x3] }
  0x81   : > { %v361_v46 = vmul.f32 0.6931472, %v1093_v36  ;;  %v370_v9 = vsel %vm369_vm3, %v1514_v12, %v368_v3  ;;  %v411_v51 = vld [vmem:[#allocation4 + $0x4] sm:$0x3]  ;;  %v421_v52 = vld [vmem:[#allocation3 + $0x6] sm:$0x3] }
  0x82   : > { %v380_v47 = vmul.f32 %v1503_v7, %v375_v37  ;;  %v378_v48 = vmul.f32 %v375_v37, %v375_v37  ;;  %v394_v49 = vmul.f32 %v1507_v8, %v389_v40  ;;  %v392_v50 = vmul.f32 %v389_v40, %v389_v40  ;;  %v425_v53 = vld [vmem:[#allocation4 + $0x6] sm:$0x3]  ;;  %s303_s17 = scalar_lea.vmem [#allocation11], %s1477_s0  ;;  %s979_s29 = sshll.u32 %s1312_s21, 4 }
  0x83   : > { %v408_v54 = vmul.f32 %v1519_v16, %v403_v42  ;;  %v406_v55 = vmul.f32 %v403_v42, %v403_v42  ;;  %v422_v56 = vmul.f32 %v1528_v22, %v417_v43  ;;  %v420_v57 = vmul.f32 %v417_v43, %v417_v43  ;;  %v372_v16 = vld [vmem:[#allocation2] sm:$0x3]  ;;  %s719_s10 = sshll.u32 %s303_s17, 4  ;;  %s1643_s21 = scalar_lea.hbm %s1754_s2, %s979_s29  ;;  %s1637_s10 = int_to_ptr.vmem [resolvable:$true] %s719_s10 }
  0x84   : > { %v381_v58 = vadd.f32 %v380_v47, %v379_v38  ;;  %v384_v59 = vadd.f32 %v383_v39, %v378_v48  ;;  %v395_v60 = vadd.f32 %v394_v49, %v393_v41  ;;  %v398_v1 = vadd.f32 %v397_v44, %v392_v50  ;;  %s692_s14 = scalar_lea.sflag [#allocation8], %s1477_s0  ;;  %s1176_s16 = scalar_lea.vmem %s1637_s10, 16 }
  0x85   : > { %v409_v12 = vadd.f32 %v408_v54, %v407_v45  ;;  %v412_v61 = vadd.f32 %v411_v51, %v406_v55  ;;  %v423_v7 = vadd.f32 %v422_v56, %v421_v52  ;;  %v426_v62 = vadd.f32 %v425_v53, %v420_v57  ;;  %p1177_p12 = scmp.ne.s32.totalorder %s1637_s10, %s1176_s16  ;;  %s1330_s27 = smov [#allocation11]  }
  0x86   : > { %382 = vst [vmem:[#allocation3] sm:$0x3] %v381_v58  ;;  %385 = vst [vmem:[#allocation4] sm:$0x3] %v384_v59  ;;  %v362_v8 = vadd.f32 %v361_v46, %v1523_v20  ;;  %s1180_s9 = sshll.u32 %s1330_s27, 4  ;;  %s1181_s9 = int_to_ptr.vmem [resolvable:$false] %s1180_s9 }
  0x87   : > { %396 = vst [vmem:[#allocation3 + $0x2] sm:$0x3] %v395_v60  ;;  %399 = vst [vmem:[#allocation4 + $0x2] sm:$0x3] %v398_v1  ;;  %p1178_p2 = pnand %p1177_p12, %p1418_p9  ;;  %s1182_s12 = scalar_lea.vmem %s1181_s9, 32 }
  0x88   : > { %410 = vst [vmem:[#allocation3 + $0x4] sm:$0x3] %v409_v12  ;;  %413 = vst [vmem:[#allocation4 + $0x4] sm:$0x3] %v412_v61  ;;  %v371_v22 = vsub.f32 %v362_v8, %v370_v9  ;;  %p1183_p6 = scmp.lt.s32.totalorder %s1637_s10, %s1181_s9  ;;  %p1184_p4 = scmp.lt.s32.totalorder %s1182_s12, %s1176_s16 }
  0x89   : > { %424 = vst [vmem:[#allocation3 + $0x6] sm:$0x3] %v423_v7  ;;  %427 = vst [vmem:[#allocation4 + $0x6] sm:$0x3] %v426_v62  ;;  %p1179_p5 = pneg %p1178_p2 }
  0x8a   : > { %v373_v63 = vadd.f32 %v372_v16, %v371_v22  ;;  %p1185_p7 = por %p1184_p4, %p1183_p6 }
  0x8c   : > { %374 = vst [vmem:[#allocation2] sm:$0x3] %v373_v63  ;;  %p1186_p1 = pnand %p1185_p7, %p1179_p5 }
  0x90   : > { %v444_v0 = vld [vmem:[#allocation3] sm:$0xff]  ;;  %v529_v4 = vld [vmem:[#allocation4] sm:$0xff] }
  0x91   : > { %v446_v5 = vcombine.high %v444_v0, %v444_v0  ;;  %v453_v6 = vrot.slane %v444_v0, %v1540_v34  ;;  %v531_v10 = vcombine.high %v529_v4, %v529_v4  ;;  %v538_v11 = vrot.slane %v529_v4, %v1540_v34 }
  0x93   : > { %v460_v13 = vrot.slane %v446_v5, %v1540_v34  ;;  %v461_v14 = vcombine.high %v453_v6, %v453_v6  ;;  %v467_v20 = vsel %vm435_vm4, %v453_v6, 0.0  ;;  %v546_v17 = vcombine.high %v538_v11, %v538_v11  ;;  %v434_v23 = vld [vmem:[#allocation2] sm:$0x3] }
  0x94   : > { %v468_v15 = vrot.slane %v467_v20, 4  ;;  %v552_v21 = vsel %vm435_vm4, %v538_v11, 0.0  ;;  %v545_v27 = vrot.slane %v531_v10, %v1540_v34  ;;  %v436_v28 = vsel %vm435_vm4, %v434_v23, 0.0 }
  0x95   : > { %v462_v24 = vcombine.high %v460_v13, %v460_v13  ;;  %v474_v25 = vsel %vm435_vm4, %v461_v14, 0.0  ;;  %v481_v26 = vsel %vm435_vm4, %v460_v13, 0.0  ;;  %v437_v32 = vrot.slane %v436_v28, 4 }
  0x96   : > { %v469_v30 = vadd.f32 %v468_v15, %v467_v20  ;;  %v475_v29 = vrot.slane %v474_v25, 4  ;;  %v482_v31 = vrot.slane %v481_v26, 4  ;;  %v553_v2 = vrot.slane %v552_v21, 4 }
  0x97   : > { %v488_v35 = vsel %vm435_vm4, %v462_v24, 0.0  ;;  %v559_v3 = vsel %vm435_vm4, %v546_v17, 0.0  ;;  %v438_v39 = vadd.f32 %v437_v32, %v436_v28  ;;  %v566_v34 = vsel %vm435_vm4, %v545_v27, 0.0 }
  0x98   : > { %v470_v19 = vrot.slane %v469_v30, 2  ;;  %v476_v36 = vadd.f32 %v475_v29, %v474_v25  ;;  %v483_v37 = vadd.f32 %v482_v31, %v481_v26  ;;  %v489_v38 = vrot.slane %v488_v35, 4 }
  0x99   : > { %v554_v40 = vadd.f32 %v553_v2, %v552_v21  ;;  %v560_v41 = vrot.slane %v559_v3, 4  ;;  %v439_v46 = vrot.slane %v438_v39, 2  ;;  %v547_v9 = vcombine.high %v545_v27, %v545_v27 }
  0x9a   : > { %v471_v42 = vadd.f32 %v470_v19, %v469_v30  ;;  %v477_v43 = vrot.slane %v476_v36, 2  ;;  %v484_v44 = vrot.slane %v483_v37, 2  ;;  %v490_v45 = vadd.f32 %v489_v38, %v488_v35 }
  0x9b   : > { %v561_v47 = vadd.f32 %v560_v41, %v559_v3  ;;  %v567_v48 = vrot.slane %v566_v34, 4  ;;  %v440_v53 = vadd.f32 %v439_v46, %v438_v39  ;;  %v555_v54 = vrot.slane %v554_v40, 2 }
  0x9c   : > { %v472_v49 = vrot.slane %v471_v42, 1  ;;  %v478_v50 = vadd.f32 %v477_v43, %v476_v36  ;;  %v485_v51 = vadd.f32 %v484_v44, %v483_v37  ;;  %v491_v52 = vrot.slane %v490_v45, 2 }
  0x9d   : > { %v562_v55 = vrot.slane %v561_v47, 2  ;;  %v568_v56 = vadd.f32 %v567_v48, %v566_v34  ;;  %v441_v60 = vrot.slane %v440_v53, 1  ;;  %v573_v8 = vsel %vm435_vm4, %v547_v9, 0.0 }
  0x9e   : > { %v479_v57 = vrot.slane %v478_v50, 1  ;;  %v486_v58 = vrot.slane %v485_v51, 1  ;;  %v492_v59 = vadd.f32 %v491_v52, %v490_v45  ;;  %v473_v1 = vadd.f32 %v472_v49, %v471_v42 }
  0x9f   : > { %v563_v12 = vadd.f32 %v562_v55, %v561_v47  ;;  %v569_v62 = vrot.slane %v568_v56, 2  ;;  %v442_v16 = vadd.f32 %v441_v60, %v440_v53  ;;  %v556_v22 = vadd.f32 %v555_v54, %v554_v40 }
  0xa0   : > { %v480_v61 = vadd.f32 %v479_v57, %v478_v50  ;;  %v493_v7 = vrot.slane %v492_v59, 1  ;;  %v487_v63 = vadd.f32 %v486_v58, %v485_v51  ;;  %v574_v5 = vrot.slane %v573_v8, 4 }
  0xa1   : > { %443 = vst [vmem:[%s303_s17] sm:$0x1] %v442_v16  ;;  %v564_v10 = vrot.slane %v563_v12, 1  ;;  %v570_v11 = vadd.f32 %v569_v62, %v568_v56 }
  0xa2   : > { %v494_v0 = vadd.f32 %v493_v7, %v492_v59  ;;  %v499_v4 = vcombine.low %v473_v1, %v480_v61  ;;  %v575_v13 = vadd.f32 %v574_v5, %v573_v8 }
  0xa4   : > { %v500_v6 = vcombine.low %v487_v63, %v494_v0 }
  0xa5   : > { %1189 = shalt.err (!%p1186_p1)
}
  0xa6   : > { %s1190_s13 = scalar_lea.hbm %s1643_s21, 16  ;;  %s1194_s25 = scalar_lea.hbm %s1754_s2, 32 }
  0xa7   : > { %p1191_p10 = scmp.ne.s32.totalorder %s1643_s21, %s1190_s13  ;;  %p1195_p8 = scmp.lt.s32.totalorder %s1643_s21, %s1754_s2 }
  0xa8   : > { %p1196_p0 = scmp.lt.s32.totalorder %s1194_s25, %s1190_s13 }
  0xa9   : > { %p1192_p13 = pnand %p1191_p10, %p1418_p9 }
  0xaa   : > { %p1197_p12 = por %p1196_p0, %p1195_p8 }
  0xab   : > { %p1193_p3 = pneg %p1192_p13 }
  0xad   : > { %p1198_p2 = pnand %p1197_p12, %p1193_p3 }
  0xaf   : > { %1201 = shalt.err (!%p1198_p2)
}
  0xb0   : > { %996 = dma.vmem_to_hbm [thread:$0]  (%p1418_p9), %s1637_s10, 16, %s1643_s21, %s692_s14   ;;  %v507_v14 = vrot.slane %v499_v4, %v1559_v18  ;;  %v514_v20 = vrot.slane %v500_v6, %v1559_v18  ;;  %v557_v15 = vrot.slane %v556_v22, 1  ;;  %v576_v17 = vrot.slane %v575_v13, 2 }
  0xb1   : > { %s310_s17 = scalar_lea.vmem [#allocation12], %s1563_s30  ;;  %s695_s11 = sand.u32 1, %s1394_s24   ;;  %v565_v23 = vadd.f32 %v564_v10, %v563_v12  ;;  %v571_v24 = vrot.slane %v570_v11, 1 }
  0xb2   : > { %s733_s29 = sshll.u32 %s310_s17, 4  ;;  %v515_v21 = vcombine.low %v507_v14, %v514_v20  ;;  %v577_v25 = vadd.f32 %v576_v17, %v575_v13  ;;  %v558_v27 = vadd.f32 %v557_v15, %v556_v22  ;;  %s1677_s21 = scalar_lea.hbm %s1755_s3, %s1569_s15  ;;  %s1670_s29 = int_to_ptr.vmem [resolvable:$true] %s733_s29 }
  0xb3   : > { %v572_v30 = vadd.f32 %v571_v24, %v570_v11  ;;  %s1681_s24 = scalar_lea.sflag [#allocation13], %s695_s11  ;;  %s1202_s14 = scalar_lea.vmem %s1670_s29, 64 }
  0xb4   : > { %v522_v26 = vrot.slane %v515_v21, %v1559_v18  ;;  %v578_v28 = vrot.slane %v577_v25, 1  ;;  %v584_v31 = vcombine.low %v558_v27, %v565_v23  ;;  %p1203_p5 = scmp.ne.s32.totalorder %s1670_s29, %s1202_s14  ;;  %s1331_s16 = smov [#allocation12]  }
  0xb5   : > { %s1206_s27 = sshll.u32 %s1331_s16, 4  ;;  %s1207_s27 = int_to_ptr.vmem [resolvable:$false] %s1206_s27 }
  0xb6   : > { %528 = vst.msk [vmem:[%s310_s17] sm:$0xf] %vm1575_vm5, %v522_v26  ;;  %v579_v29 = vadd.f32 %v578_v28, %v577_v25  ;;  %p1204_p6 = pnand %p1203_p5, %p1418_p9  ;;  %s1208_s9 = scalar_lea.vmem %s1207_s27, 128 }
  0xb7   : > { %p1209_p7 = scmp.lt.s32.totalorder %s1670_s29, %s1207_s27  ;;  %p1210_p1 = scmp.lt.s32.totalorder %s1208_s9, %s1202_s14 }
  0xb8   : > { %p1205_p4 = pneg %p1204_p6 }
  0xb9   : > { %p1211_p10 = por %p1210_p1, %p1209_p7 }
  0xbb   : > { %p1212_p13 = pnand %p1211_p10, %p1205_p4 }
  0xbd   : > { %1215 = shalt.err (!%p1212_p13)
}
  0xbe   : > { %s1216_s12 = scalar_lea.hbm %s1677_s21, 64  ;;  %s1220_s20 = scalar_lea.hbm %s1755_s3, 128 }
  0xbf   : > { %p1217_p3 = scmp.ne.s32.totalorder %s1677_s21, %s1216_s12  ;;  %p1221_p12 = scmp.lt.s32.totalorder %s1677_s21, %s1755_s3 }
  0xc0   : > { %p1222_p2 = scmp.lt.s32.totalorder %s1220_s20, %s1216_s12 }
  0xc1   : > { %p1218_p8 = pnand %p1217_p3, %p1418_p9 }
  0xc2   : > { %p1223_p5 = por %p1222_p2, %p1221_p12 }
  0xc3   : > { %p1219_p0 = pneg %p1218_p8 }
  0xc5   : > { %p1224_p6 = pnand %p1223_p5, %p1219_p0 }
  0xc7   : > { %1227 = shalt.err (!%p1224_p6)
}
  0xc8   : > { %997 = dma.vmem_to_hbm [thread:$0]  (%p1418_p9), %s1670_s29, 64, %s1677_s21, %s1681_s24   ;;  %v585_v32 = vcombine.low %v572_v30, %v579_v29  ;;  %v592_v35 = vrot.slane %v584_v31, %v1559_v18 }
  0xc9   : > { %s317_s7 = scalar_lea.vmem [#allocation14], %s1563_s30  ;;  %s745_s28 = scalar_lea.hbm %s1756_s4, %s1569_s15 }
  0xca   : > { %v599_v2 = vrot.slane %v585_v32, %v1559_v18  ;;  %s747_s17 = sshll.u32 %s317_s7, 4  ;;  %s1332_s29 = smov [#allocation14]   ;;  %s748_s17 = int_to_ptr.vmem [resolvable:$true] %s747_s17 }
  0xcb   : > { %s1228_s14 = scalar_lea.vmem %s748_s17, 64  ;;  %s1232_s21 = sshll.u32 %s1332_s29, 4  ;;  %s1233_s21 = int_to_ptr.vmem [resolvable:$false] %s1232_s21 }
  0xcc   : > { %v600_v3 = vcombine.low %v592_v35, %v599_v2  ;;  %p1229_p4 = scmp.ne.s32.totalorder %s748_s17, %s1228_s14  ;;  %s1234_s30 = scalar_lea.vmem %s1233_s21, 128 }
  0xcd   : > { %p1235_p10 = scmp.lt.s32.totalorder %s748_s17, %s1233_s21  ;;  %p1236_p13 = scmp.lt.s32.totalorder %s1234_s30, %s1228_s14 }
  0xce   : > { %v607_v19 = vrot.slane %v600_v3, %v1559_v18  ;;  %p1230_p7 = pnand %p1229_p4, %p1418_p9 }
  0xcf   : > { %p1237_p3 = por %p1236_p13, %p1235_p10 }
  0xd0   : > { %609 = vst.msk [vmem:[%s317_s7] sm:$0xf] %vm1575_vm5, %v607_v19  ;;  %p1231_p1 = pneg %p1230_p7 }
  0xd2   : > { %p1238_p8 = pnand %p1237_p3, %p1231_p1 }
  0xd4   : > { %1241 = shalt.err (!%p1238_p8)
}
  0xd5   : > { %s1242_s16 = scalar_lea.hbm %s745_s28, 64  ;;  %s1246_s9 = scalar_lea.hbm %s1756_s4, 128 }
  0xd6   : > { %p1243_p0 = scmp.ne.s32.totalorder %s745_s28, %s1242_s16  ;;  %p1247_p5 = scmp.lt.s32.totalorder %s745_s28, %s1756_s4 }
  0xd7   : > { %p1248_p6 = scmp.lt.s32.totalorder %s1246_s9, %s1242_s16 }
  0xd8   : > { %p1244_p12 = pnand %p1243_p0, %p1418_p9 }
  0xd9   : > { %p1249_p4 = por %p1248_p6, %p1247_p5 }
  0xda   : > { %p1245_p2 = pneg %p1244_p12 }
  0xdc   : > { %p1250_p7 = pnand %p1249_p4, %p1245_p2 }
  0xde   : > { %1253 = shalt.err (!%p1250_p7)
}
  0xdf   : > { %998 = dma.vmem_to_hbm [thread:$0]  (%p1418_p9), %s748_s17, 64, %s745_s28, %s1681_s24  }
  0xe0 PF: > { %s773_s0 = sand.u32 1, %s1300_s18   ;;  %p1774_p1 = scmp.ge.s32.totalorder %s1320_s23, 2 }
  0xe1   : > { %s774_s20 = scalar_lea.sflag [#allocation8], %s773_s0 }
  0xe2   : > { %p1012_p10 = pnand %p1774_p1, %p1427_p11 }
  0xe4   : > { %p1013_p13 = pneg %p1012_p10 }
  0xe6   : > { %1287 = dma.done.wait (%p1013_p13), %s774_s20, 16  }
  0xe7   : > { %1289 = vsyncadd (%p1013_p13), %s774_s20, 4294967280  ;;  %s1775_s25 = sadd.s32 4294967294, %s1320_s23  }
  0xe8   : > { %s781_s26 = sand.u32 1, %s1775_s25  }
  0xe9   : > { %s782_s7 = scalar_lea.sflag [#allocation13], %s781_s26 }
  0xea   : > { %1291 = dma.done.wait (%p1013_p13), %s782_s7, 128  }
  0xeb   : > { %1293 = vsyncadd (%p1013_p13), %s782_s7, 4294967168  ;;  %s800_s6 = scalar_lea.sflag [#allocation16], %s773_s0 }
  0xec   : > { %1295 = dma.done.wait (%p1013_p13), %s800_s6, 64  }
  0xed   : > { %1297 = vsyncadd (%p1013_p13), %s800_s6, 4294967232  ;;  %s31_s23 = sadd.s32 1, %s1320_s23   ;;  %s1776_s8 = sld [smem:[#allocation22_spill]] }
  0xee   : > { %p28_p9 = scmp.ge.s32.totalorder %s31_s23, 4   ;;  %s1777_s20 = sld [smem:[#allocation24_spill]] }
  0xef   : > { %s1778_s24 = sld [smem:[#allocation23_spill]]  ;;  %s1779_s18 = smov %s1304_s19 }
  0xf0   : > { %s1781_s21 = smov %s1316_s22 }
  0xf1   :  { %30 = sbr.rel (!%p28_p9) target bundleno = 14 (0xe), region = 146 }
  0xf3   : > { %s1780_s19 = smov %s1776_s8 }
  0xf5   : > { %s1782_s22 = smov %s1778_s24 }
  0xf6   :  { %805 = vsyncpa [#allocation7], 1 }
  0xf7   :  { %807 = vsyncpa [#allocation7 + $0x1], 1 }
  0xf8   :  { %808 = vsyncpa [#allocation10], 1 }
  0xf9   :  { %810 = vsyncpa [#allocation10 + $0x1], 1 }
  0xfa   :  { %811 = vsyncpa [#allocation8], 1 }
  0xfb   :  { %813 = vsyncpa [#allocation8 + $0x1], 1 }
  0xfc   :  { %814 = vsyncpa [#allocation13], 1 }
  0xfd   :  { %816 = vsyncpa [#allocation13 + $0x1], 1 }
  0xfe   :  { %817 = vsyncpa [#allocation16], 1 }
  0xff   :  { %819 = vsyncpa [#allocation16 + $0x1], 1 }

</bundles_post_ra>
